<compile_context>
chip_gen: v7x
topology: tpu7x:2x2x1
jax: 0.10.0
libtpu: 0.0.40
codegen_flags: <defaults>
</compile_context>

<pallas_src>
import jax
import jax.numpy as jnp
from jax.experimental import pallas as pl
from jax.experimental.pallas import tpu as pltpu


def _round_up(a: int, b: int) -> int:
    return (a + b - 1) // b * b


def _sublane_pad(c: int, itemsize: int) -> int:
    """Channel count rounded up to packed-sublane granularity for (.., C, TM) blocks."""
    gran = {4: 8, 2: 16, 1: 32}.get(itemsize, 8)
    return _round_up(max(c, 1), gran)


def _hw_budgets():
    """Return (per-input-block byte budget, scoped VMEM limit) for this chip.

    v5e/v6e (128 MiB VMEM): 8 MiB blocks, ~100 MiB scoped limit.
    v7x (64 MiB VMEM):      4 MiB blocks, ~48 MiB scoped limit
                            (2x padded input + 2x output stays <= ~24 MiB).
    """
    cap = 64 * 1024 * 1024  # assume the smallest (v7x per-core) if query fails
    try:
        info = pltpu.get_tpu_info()
        cap = int(getattr(info, "vmem_capacity_bytes", cap)) or cap
    except Exception:
        pass
    cap = max(cap, 32 * 1024 * 1024)
    block_budget = int(min(max(cap // 16, 2 * 1024 * 1024), 8 * 1024 * 1024))
    vmem_limit = int(min(cap - 16 * 1024 * 1024, 100 * 1024 * 1024))
    return block_budget, vmem_limit


def _flat_kernel(w_ref, x_ref, o_ref):
    """Fast path.

    w_ref: (C,)      softmaxed channel weights in SMEM (scalar reads)
    x_ref: (TN, C*M) NCHW-contiguous rows; channel c = lanes [c*M, (c+1)*M)
    o_ref: (TN, M)   relu(weighted channel sum), lane-dense store

    Per-channel *ref* slices cast per slice -> only ~one (TN, M) f32 value is
    live at a time (no full-block f32 materialization / spill traffic).
    """
    m = o_ref.shape[-1]
    c_dim = x_ref.shape[-1] // m
    acc = x_ref[:, 0:m].astype(jnp.float32) * w_ref[0]
    for c in range(1, c_dim):
        acc = acc + x_ref[:, c * m:(c + 1) * m].astype(jnp.float32) * w_ref[c]
    o_ref[...] = jnp.maximum(acc, 0.0).astype(o_ref.dtype)


def _nchw_kernel(w_ref, x_ref, o_ref):
    """Fallback for spatial extents that are not lane (128) aligned.

    w_ref: (1, C, 1) f32 VMEM; x_ref: (TN, C, TM); o_ref: (TN, TM)
    One broadcast multiply + a single XLU sublane-reduce per tile
    (no per-channel sublane extract/repack relayouts).
    """
    prod = x_ref[...].astype(jnp.float32) * w_ref[...]
    o_ref[...] = jnp.maximum(jnp.sum(prod, axis=1), 0.0).astype(o_ref.dtype)


def heterogeneous_conv(x, weight):
    """x: (N, C, H, W), weight: (1, C, 1, 1).

    Returns (H_out, [W_h]) matching the PyTorch module:
      H_out: (N, H, W) = relu(sum(x * softmax(weight, dim=1), dim=1))
      W_h:   list with one (1, C, 1, 1) softmaxed-weight array
    """
    N, C, H, W = x.shape
    M = H * W
    itemsize = jnp.dtype(x.dtype).itemsize
    block_budget, vmem_limit = _hw_budgets()

    # Tiny grid-invariant softmax of the C weights: done once in the wrapper,
    # passed to the kernel (not recomputed / re-stored per grid step).
    w_soft = jax.nn.softmax(weight.reshape(C).astype(jnp.float32))  # (C,)

    flat_row_bytes = C * M * itemsize
    use_flat = (M % 128 == 0) and (8 * flat_row_bytes <= block_budget)

    if use_flat:
        # --- fast path: channels as static lane slices ------------------------
        x2 = x.reshape(N, C * M)  # free reshape, stays NCHW-contiguous in HBM

        # Batch tile from the byte budget (multiples of 8); cdiv grid + masking.
        tn = max(8, (block_budget // flat_row_bytes) // 8 * 8)
        tn = min(tn, _round_up(N, 8))
        if N <= tn:
            tn = N  # single un-ragged block covering the whole batch
        nb = int(pl.cdiv(N, tn))
        # v7x megacore: prefer >=2 blocks on the parallel axis when possible.
        if nb == 1 and N >= 16:
            tn = _round_up(int(pl.cdiv(N, 2)), 8)
            nb = int(pl.cdiv(N, tn))

        x_spec_kwargs = {}
        if (nb >= 3 and hasattr(pl, "Buffered")
                and 3 * tn * flat_row_bytes + 2 * tn * M * itemsize <= vmem_limit):
            x_spec_kwargs["pipeline_mode"] = pl.Buffered(3)

        out2 = pl.pallas_call(
            _flat_kernel,
            out_shape=jax.ShapeDtypeStruct((N, M), x.dtype),
            grid=(nb,),
            in_specs=[
                pl.BlockSpec(memory_space=pltpu.MemorySpace.SMEM),          # weights
                pl.BlockSpec((tn, C * M), lambda i: (i, 0), **x_spec_kwargs),
            ],
            out_specs=pl.BlockSpec((tn, M), lambda i: (i, 0)),
            compiler_params=pltpu.CompilerParams(
                dimension_semantics=("parallel",),
                vmem_limit_bytes=vmem_limit,
            ),
        )(w_soft, x2)
    else:
        # --- general path: (TN, C, TM) blocks + XLU sublane reduce ------------
        x3 = x.reshape(N, C, M)
        pad_c = _sublane_pad(C, itemsize)  # real VMEM footprint of the C axis

        # Spatial tile: lane aligned, budgeted with the *padded* channel count.
        if 8 * pad_c * M * itemsize <= block_budget:
            tm = M  # full spatial row per block (always a legal block dim)
        else:
            tm = max(128, (block_budget // (8 * pad_c * itemsize)) // 128 * 128)
        # Batch tile from the remaining budget (multiples of 8).
        tn = max(8, (block_budget // (pad_c * tm * itemsize)) // 8 * 8)
        tn = min(tn, _round_up(N, 8))
        if N <= tn:
            tn = N
        nb = int(pl.cdiv(N, tn))
        # v7x megacore: split M if the grid would otherwise be a single block.
        if nb == 1 and int(pl.cdiv(M, tm)) == 1 and M >= 256:
            tm = max(128, _round_up(int(pl.cdiv(M, 2)), 128))
        mb = int(pl.cdiv(M, tm))

        x_spec_kwargs = {}
        if (nb * mb >= 3 and hasattr(pl, "Buffered")
                and 3 * tn * pad_c * tm * itemsize + 2 * tn * tm * itemsize <= vmem_limit):
            x_spec_kwargs["pipeline_mode"] = pl.Buffered(3)

        w3 = w_soft.reshape(1, C, 1)
        out2 = pl.pallas_call(
            _nchw_kernel,
            out_shape=jax.ShapeDtypeStruct((N, M), x.dtype),
            grid=(nb, mb),
            in_specs=[
                pl.BlockSpec((1, C, 1), lambda i, j: (0, 0, 0)),             # weights
                pl.BlockSpec((tn, C, tm), lambda i, j: (i, 0, j), **x_spec_kwargs),
            ],
            out_specs=pl.BlockSpec((tn, tm), lambda i, j: (i, j)),
            compiler_params=pltpu.CompilerParams(
                dimension_semantics=("parallel", "parallel"),
                vmem_limit_bytes=vmem_limit,
            ),
        )(w3, x3)

    h_out = out2.reshape(N, H, W)
    w_h = w_soft.astype(weight.dtype).reshape(1, C, 1, 1)
    return h_out, [w_h]


if __name__ == "__main__":
    # Module hyperparameters: in_channels=4; Conv2 forces out_channels -> 1,
    # so the reduction produces an (N, H, W) map.
    N, C, H, W = 2, 4, 16, 16

    key = jax.random.PRNGKey(0)
    x = jax.random.normal(key, (N, C, H, W), dtype=jnp.float32)

    # Deterministic parameter init per reset_parameters(): constant 0.2
    weight = jnp.full((1, C, 1, 1), 0.2, dtype=jnp.float32)

    h_out, w2_list = heterogeneous_conv(x, weight)
    h_out = jax.block_until_ready(h_out)
    w_h = jax.block_until_ready(w2_list[0])

    # Pure-JAX reference of the PyTorch forward pass
    w_soft_ref = jax.nn.softmax(weight, axis=1)                  # (1, C, 1, 1)
    h_ref = jnp.maximum(jnp.sum(x * w_soft_ref, axis=1), 0.0)    # relu

    assert h_out.shape == (N, H, W)
    assert w_h.shape == (1, C, 1, 1)
    assert jnp.allclose(h_out, h_ref, atol=1e-5, rtol=1e-5)
    assert jnp.allclose(w_h, w_soft_ref, atol=1e-6, rtol=1e-6)

    print("KERNEL_OK")
</pallas_src>

<mosaic_0001>
module attributes {stable_mosaic.version = 11 : i64} {
  func.func @_flat_kernel(%arg0: i32, %arg1: memref<4xf32, #tpu.memory_space<smem>>, %arg2: memref<2x1024xf32, #tpu.memory_space<vmem>>, %arg3: memref<2x256xf32, #tpu.memory_space<vmem>>) attributes {dimension_semantics = [#tpu.dimension_semantics<parallel>], iteration_bounds = array<i64: 1>, scalar_prefetch = 0 : i64, scratch_operands = 0 : i64, tpu.core_type = #tpu.core_type<tc>, window_params = [{transform_indices = @transform_0, window_bounds = array<i64: 4>}, {transform_indices = @transform_1, window_bounds = array<i64: 2, 1024>}, {transform_indices = @transform_2, window_bounds = array<i64: 2, 256>}]} {
    %c0 = arith.constant 0 : index
    %c0_0 = arith.constant 0 : index
    %0 = vector.load %arg2[%c0, %c0_0] : memref<2x1024xf32, #tpu.memory_space<vmem>>, vector<2x256xf32>
    %c0_1 = arith.constant 0 : index
    %1 = memref.load %arg1[%c0_1] : memref<4xf32, #tpu.memory_space<smem>>
    %2 = vector.broadcast %1 : f32 to vector<2x256xf32>
    %3 = arith.mulf %0, %2 : vector<2x256xf32>
    %c0_2 = arith.constant 0 : index
    %c256 = arith.constant 256 : index
    %4 = vector.load %arg2[%c0_2, %c256] : memref<2x1024xf32, #tpu.memory_space<vmem>>, vector<2x256xf32>
    %c1 = arith.constant 1 : index
    %5 = memref.load %arg1[%c1] : memref<4xf32, #tpu.memory_space<smem>>
    %6 = vector.broadcast %5 : f32 to vector<2x256xf32>
    %7 = arith.mulf %4, %6 : vector<2x256xf32>
    %8 = arith.addf %3, %7 : vector<2x256xf32>
    %c0_3 = arith.constant 0 : index
    %c512 = arith.constant 512 : index
    %9 = vector.load %arg2[%c0_3, %c512] : memref<2x1024xf32, #tpu.memory_space<vmem>>, vector<2x256xf32>
    %c2 = arith.constant 2 : index
    %10 = memref.load %arg1[%c2] : memref<4xf32, #tpu.memory_space<smem>>
    %11 = vector.broadcast %10 : f32 to vector<2x256xf32>
    %12 = arith.mulf %9, %11 : vector<2x256xf32>
    %13 = arith.addf %8, %12 : vector<2x256xf32>
    %c0_4 = arith.constant 0 : index
    %c768 = arith.constant 768 : index
    %14 = vector.load %arg2[%c0_4, %c768] : memref<2x1024xf32, #tpu.memory_space<vmem>>, vector<2x256xf32>
    %c3 = arith.constant 3 : index
    %15 = memref.load %arg1[%c3] : memref<4xf32, #tpu.memory_space<smem>>
    %16 = vector.broadcast %15 : f32 to vector<2x256xf32>
    %17 = arith.mulf %14, %16 : vector<2x256xf32>
    %18 = arith.addf %13, %17 : vector<2x256xf32>
    %cst = arith.constant 0.000000e+00 : f32
    %19 = vector.broadcast %cst : f32 to vector<2x256xf32>
    %20 = arith.maximumf %18, %19 : vector<2x256xf32>
    %c0_5 = arith.constant 0 : index
    %c0_6 = arith.constant 0 : index
    %21 = vector.load %arg3[%c0_5, %c0_6] : memref<2x256xf32, #tpu.memory_space<vmem>>, vector<2x256xf32>
    tpu.vector_store %arg3[%c0_5, %c0_6], %20 {strides = array<i32>} : memref<2x256xf32, #tpu.memory_space<vmem>>, vector<2x256xf32>,
    return
  }
  func.func @transform_0(%arg0: i32) -> i32 {
    %c0_i32 = arith.constant 0 : i32
    %c0_i32_0 = arith.constant 0 : i32
    return %c0_i32 : i32
  }
  func.func @transform_1(%arg0: i32) -> (i32, i32) {
    %c0_i32 = arith.constant 0 : i32
    %c0_i32_0 = arith.constant 0 : i32
    return %arg0, %c0_i32 : i32, i32
  }
  func.func @transform_2(%arg0: i32) -> (i32, i32) {
    %c0_i32 = arith.constant 0 : i32
    %c0_i32_0 = arith.constant 0 : i32
    return %arg0, %c0_i32 : i32, i32
  }
}

</mosaic_0001>

<bundles_post_ra>
// kernel: tpu_custom_call.1
= control target key start
LH: loop header
LB: loop body
LE: loop exit
PB: predicated region body
PF: predicated region fallthrough
CT: control target
= control target key end

     0   :  { %7 = vsyncpa [#allocation5], 0  ;;  %s192_s0 = inlined_call_operand.hbm [shape: f32[4], index: 0, kind: input, shape index: {}]   ;;  %s193_s1 = inlined_call_operand.hbm [shape: f32[2,1024], index: 1, kind: input, shape index: {}]   ;;  %s194_s2 = inlined_call_operand.hbm [shape: f32[2,256], index: 2, kind: output, shape index: {}]  }
   0x1   :  { %8 = vsyncpa [#allocation3], 0 }
   0x2   :  { %9 = vsyncpa [#allocation4], 0  ;;  %s78_s11 = scalar_lea.hbm %s192_s0, 16 }
   0x3   :  { %p79_p0 = scmp.ne.s32.totalorder %s192_s0, %s78_s11  ;;  %p82_p1 = scmp.lt.u32.totalorder %s78_s11, %s192_s0 }
   0x5   :  { %p84_p2 = pnand %p82_p1, %p79_p0 }
   0x7   :  { %87 = shalt.err (!%p84_p2)
}
   0x8   :  { %s138_s16 = smov [#allocation2]   ;;  %s139_s19 = smov [#allocation6]  }
   0x9   :  { %17 = dma.hbm_to_smem %s192_s0, 16, %s138_s16, [#allocation5]  }
   0xa   :  { %s24_s20 = sshll.u32 %s139_s19, 4  ;;  %s88_s23 = scalar_lea.hbm %s193_s1, 256  ;;  %s25_s20 = int_to_ptr.vmem [resolvable:$true] %s24_s20 }
   0xb   :  { %p89_p3 = scmp.ne.s32.totalorder %s193_s1, %s88_s23  ;;  %p92_p4 = scmp.lt.u32.totalorder %s88_s23, %s193_s1 }
   0xd   :  { %p94_p5 = pnand %p92_p4, %p89_p3 }
   0xf   :  { %97 = shalt.err (!%p94_p5)
}
  0x10   :  { %s98_s28 = scalar_lea.vmem %s25_s20, 256  ;;  %p103_p7 = scmp.lt.s32.totalorder %s25_s20, %s25_s20 }
  0x11   :  { %p99_p6 = scmp.ne.s32.totalorder %s25_s20, %s98_s28  ;;  %p104_p8 = scmp.lt.s32.totalorder %s98_s28, %s98_s28 }
  0x13   :  { %p105_p9 = por %p104_p8, %p103_p7 }
  0x15   :  { %p106_p10 = pnand %p105_p9, %p99_p6 }
  0x17   :  { %109 = shalt.err (!%p106_p10)
}
  0x18   :  { %27 = dma.hbm_to_vmem [thread:$0]  %s193_s1, 256, %s25_s20, [#allocation3]  }
  0x19   :  { %132 = dma.done.wait [#allocation5], 16  }
  0x1a   :  { %133 = vsyncadd [#allocation5], 4294967280 }
  0x1b   :  { %134 = dma.done.wait [#allocation3], 256  }
  0x1c   :  { %135 = vsyncadd [#allocation3], 4294967040 }
  0x1d   :  { %34 = sfence }
  0x1e   :  { %s36_s30 = sld [smem:[#allocation2]]  ;;  %s72_s3 = sld [smem:[#allocation2 + $0x1]]  ;;  %v35_v0 = vld [vmem:[#allocation6] sm:$0xf]  ;;  %v39_v1 = vld [vmem:[#allocation6 + $0x4] sm:$0xf] }
  0x1f   :  { %s73_s4 = sld [smem:[#allocation2 + $0x2]]  ;;  %s74_s5 = sld [smem:[#allocation2 + $0x3]]  ;;  %v44_v2 = vld [vmem:[#allocation6 + $0x8] sm:$0xf]  ;;  %v49_v7 = vld [vmem:[#allocation6 + $0xc] sm:$0xf] }
  0x20   :  { %s140_s1 = smov [#allocation7]  }
  0x21   :  { %s62_s6 = sshll.u32 %s140_s1, 4  ;;  %s63_s6 = int_to_ptr.vmem [resolvable:$true] %s62_s6 }
  0x22   :  { %s110_s7 = scalar_lea.vmem %s63_s6, 64  ;;  %p115_p12 = scmp.lt.s32.totalorder %s63_s6, %s63_s6 }
  0x23   :  { %p111_p11 = scmp.ne.s32.totalorder %s63_s6, %s110_s7  ;;  %p116_p13 = scmp.lt.s32.totalorder %s110_s7, %s110_s7 }
  0x24   :  { %v37_v3 = vstv %s36_s30  ;;  %v41_v5 = vstv %s72_s3 }
  0x25   :  { %v38_v4 = vmul.f32 %v37_v3, %v35_v0  ;;  %v46_v6 = vstv %s73_s4  ;;  %v42_v8 = vmul.f32 %v41_v5, %v39_v1  ;;  %v51_v10 = vstv %s74_s5  ;;  %p117_p0 = por %p116_p13, %p115_p12 }
  0x26   :  { %v47_v9 = vmul.f32 %v46_v6, %v44_v2  ;;  %v52_v12 = vmul.f32 %v51_v10, %v49_v7 }
  0x27   :  { %v43_v11 = vadd.f32 %v42_v8, %v38_v4  ;;  %p118_p1 = pnand %p117_p0, %p111_p11 }
  0x29   :  { %v48_v13 = vadd.f32 %v47_v9, %v43_v11 }
  0x2b   :  { %v53_v14 = vadd.f32 %v52_v12, %v48_v13 }
  0x2d   :  { %v54_v15 = vmax.f32 %v53_v14, 0.0 }
  0x2f   :  { %55 = vst [vmem:[#allocation7] sm:$0xf] %v54_v15 }
  0x30   :  { %121 = shalt.err (!%p118_p1)
}
  0x31   :  { %s122_s10 = scalar_lea.hbm %s194_s2, 64 }
  0x32   :  { %p123_p2 = scmp.ne.s32.totalorder %s194_s2, %s122_s10  ;;  %p126_p3 = scmp.lt.u32.totalorder %s122_s10, %s194_s2 }
  0x34   :  { %p128_p4 = pnand %p126_p3, %p123_p2 }
  0x36   :  { %131 = shalt.err (!%p128_p4)
}
  0x37   :  { %65 = dma.vmem_to_hbm [thread:$0]  %s63_s6, 64, %s194_s2, [#allocation4]  }
  0x38   :  { %136 = dma.done.wait [#allocation4], 64  }
  0x39   :  { %137 = vsyncadd [#allocation4], 4294967232 }
  0x3a   :  { %69 = vsyncpa [#allocation3], 1 }
  0x3b   :  { %70 = vsyncpa [#allocation4], 1 }
  0x3c   :  { %71 = vsyncpa [#allocation5], 1 }

</bundles_post_ra>
